<compile_context>
chip_gen: v7x
topology: tpu7x:2x2x1
jax: 0.10.0
libtpu: 0.0.40
codegen_flags: <defaults>
</compile_context>

<pallas_src>
import jax
import jax.numpy as jnp
import numpy as np
from jax.experimental import pallas as pl
from jax.experimental.pallas import tpu as pltpu


def linear_attn_kernel(q_ref, mask_ref, w_ref, b_ref, out_ref):
    # q_ref    : (TB, S, D) bf16/f32 VMEM tile of the question
    # mask_ref : (TB, S)    int8     VMEM tile of the mask (1 = mask out)
    # w_ref    : (1, D)     f32      VMEM (same block every grid step -> resident)
    # b_ref    : (1, 1)     f32      SMEM scalar
    # out_ref  : (TB, S)    f32      VMEM output tile
    q = q_ref[...].astype(jnp.float32)                 # cast AFTER the (cheap) bf16 DMA
    w = w_ref[...].astype(jnp.float32)                 # (1, D)
    b = b_ref[0, 0]

    # nn.Linear(D, 1) as VPU multiply + XLU cross-lane reduce (keeps the MXU out of a
    # width-1 projection and avoids a (TB, S, 1) lane-sparse intermediate).
    scores = jnp.sum(q * w[0], axis=-1) + b            # (TB, S)

    # masked_fill(mask == 1, -inf).  Fully-masked rows produce NaN, same as torch.
    mask = mask_ref[...].astype(jnp.int32)
    scores = jnp.where(mask == 1, jnp.float32(-jnp.inf), scores)

    # Softmax over the S axis.  The full S extent is resident per block, so a one-pass
    # softmax is exact.
    # TODO(synk): for very large S, tile S with an "arbitrary" grid axis + online softmax
    #             (running max / running sum scratch, pl.when init/finalize).
    m = jnp.max(scores, axis=1, keepdims=True)
    e = jnp.exp(scores - m)
    denom = jnp.sum(e, axis=1, keepdims=True)
    out_ref[...] = (e / denom).astype(out_ref.dtype)


def _pick_block_b(B, S, D, itemsize):
    # Target ~8 MiB of question per grid step; x2 pipeline buffers + mask/weight/output
    # stays well under the v7x 64 MiB VMEM (and trivially under v5e/v6e's 128 MiB).
    target_bytes = 8 * 1024 * 1024
    rows = max(1, target_bytes // max(1, S * D * itemsize))
    if rows >= B or B <= 8:
        return B
    # Keep the second-to-last dim of the 2-D (TB, S) mask/output blocks a multiple of 8.
    return max(8, (rows // 8) * 8)


def linear_attention(question, question_mask, weight, bias, *, block_b=None):
    """question: (B, S, D) bf16/f32; question_mask: (B, S) int-like (1 = masked);
    weight: (1, D); bias: (1,)  ->  alpha: (B, S) f32 (softmax over S)."""
    B, S, D = question.shape
    if block_b is None:
        block_b = _pick_block_b(B, S, D, question.dtype.itemsize)
    grid = (pl.cdiv(B, block_b),)

    w = weight.astype(jnp.float32).reshape(1, D)
    b = bias.astype(jnp.float32).reshape(1, 1)
    mask_i8 = question_mask.astype(jnp.int8)            # 4x less mask DMA than int32

    return pl.pallas_call(
        linear_attn_kernel,
        out_shape=jax.ShapeDtypeStruct((B, S), jnp.float32),
        grid=grid,
        in_specs=[
            pl.BlockSpec((block_b, S, D), lambda i: (i, 0, 0)),   # question tile
            pl.BlockSpec((block_b, S), lambda i: (i, 0)),         # mask tile
            pl.BlockSpec((1, D), lambda i: (0, 0)),               # weight: resident block
            pl.BlockSpec(memory_space=pltpu.MemorySpace.SMEM),    # bias scalar in SMEM
        ],
        out_specs=pl.BlockSpec((block_b, S), lambda i: (i, 0)),
        compiler_params=pltpu.CompilerParams(
            dimension_semantics=("parallel",),        # rows independent -> megacore on v7x
            vmem_limit_bytes=48 * 1024 * 1024,        # fits v7x (64 MiB), raises v5e/v6e default
        ),
    )(question, mask_i8, w, b)


def _reference(question, question_mask, weight, bias):
    # Pure-JAX reference mirroring the PyTorch forward (Linear(D,1) -> mask -> softmax).
    q32 = question.astype(jnp.float32)
    w32 = weight.astype(jnp.float32)
    b32 = bias.astype(jnp.float32)
    scores = jnp.sum(q32 * w32[0], axis=-1) + b32[0]        # (B, S)
    scores = jnp.where(question_mask == 1, -jnp.inf, scores)
    return jax.nn.softmax(scores, axis=1)


if __name__ == "__main__":
    B, S, D = 2, 8, 32

    key = jax.random.PRNGKey(0)
    k_q, k_m, k_w, k_b = jax.random.split(key, 4)

    # Activation kept bf16 in HBM (the kernel casts to f32 in VMEM); mask as int8.
    question = jax.random.normal(k_q, (B, S, D), dtype=jnp.float32).astype(jnp.bfloat16)

    # Random 0/1 mask; guarantee at least one unmasked position per row so the softmax
    # is well-defined (all-masked rows give NaN in torch too).
    mask = (jax.random.uniform(k_m, (B, S)) < 0.3).astype(jnp.int8)
    mask = mask.at[:, 0].set(0)

    # nn.Linear(input_dim, 1) parameters: weight (1, D), bias (1,)
    weight = jax.random.normal(k_w, (1, D), dtype=jnp.float32) * 0.1
    bias = jax.random.normal(k_b, (1,), dtype=jnp.float32) * 0.1

    alpha = linear_attention(question, mask, weight, bias)
    alpha = jax.block_until_ready(alpha)

    ref = _reference(question, mask, weight, bias)
    np.testing.assert_allclose(np.asarray(alpha), np.asarray(ref), rtol=1e-5, atol=1e-5)

    print("KERNEL_OK")
</pallas_src>

<mosaic_0001>
module attributes {stable_mosaic.version = 11 : i64} {
  func.func @linear_attn_kernel(%arg0: i32, %arg1: memref<2x8x32xbf16, #tpu.memory_space<vmem>>, %arg2: memref<2x8xi8, #tpu.memory_space<vmem>>, %arg3: memref<1x32xf32, #tpu.memory_space<vmem>>, %arg4: memref<1x1xf32, #tpu.memory_space<smem>>, %arg5: memref<2x8xf32, #tpu.memory_space<vmem>>) attributes {dimension_semantics = [#tpu.dimension_semantics<parallel>], iteration_bounds = array<i64: 1>, scalar_prefetch = 0 : i64, scratch_operands = 0 : i64, tpu.core_type = #tpu.core_type<tc>, window_params = [{transform_indices = @transform_0, window_bounds = array<i64: 2, 8, 32>}, {transform_indices = @transform_1, window_bounds = array<i64: 2, 8>}, {pipeline_mode = #tpu.pipeline_mode<synchronous>, transform_indices = @transform_2, window_bounds = array<i64: 1, 32>}, {transform_indices = @transform_3, window_bounds = array<i64: 1, 1>}, {transform_indices = @transform_4, window_bounds = array<i64: 2, 8>}]} {
    %c0 = arith.constant 0 : index
    %c0_0 = arith.constant 0 : index
    %c0_1 = arith.constant 0 : index
    %0 = vector.load %arg1[%c0, %c0_0, %c0_1] : memref<2x8x32xbf16, #tpu.memory_space<vmem>>, vector<2x8x32xbf16>
    %1 = arith.extf %0 : vector<2x8x32xbf16> to vector<2x8x32xf32>
    %c0_2 = arith.constant 0 : index
    %c0_3 = arith.constant 0 : index
    %2 = vector.load %arg3[%c0_2, %c0_3] : memref<1x32xf32, #tpu.memory_space<vmem>>, vector<1x32xf32>
    %c0_4 = arith.constant 0 : index
    %c0_5 = arith.constant 0 : index
    %3 = memref.load %arg4[%c0_4, %c0_5] : memref<1x1xf32, #tpu.memory_space<smem>>
    %4 = vector.shape_cast %2 : vector<1x32xf32> to vector<32xf32>
    %5 = vector.shape_cast %4 : vector<32xf32> to vector<1x1x32xf32>
    %6 = vector.broadcast %5 : vector<1x1x32xf32> to vector<2x8x32xf32>
    %7 = arith.mulf %1, %6 : vector<2x8x32xf32>
    %cst = arith.constant dense<0.000000e+00> : vector<2x8xf32>
    %8 = vector.multi_reduction <add>, %7, %cst [2] : vector<2x8x32xf32> to vector<2x8xf32>
    %9 = vector.broadcast %3 : f32 to vector<2x8xf32>
    %10 = arith.addf %8, %9 : vector<2x8xf32>
    %c0_6 = arith.constant 0 : index
    %c0_7 = arith.constant 0 : index
    %11 = vector.load %arg2[%c0_6, %c0_7] : memref<2x8xi8, #tpu.memory_space<vmem>>, vector<2x8xi8>
    %12 = arith.extsi %11 : vector<2x8xi8> to vector<2x8xi32>
    %c1_i32 = arith.constant 1 : i32
    %13 = vector.broadcast %c1_i32 : i32 to vector<2x8xi32>
    %14 = arith.cmpi eq, %12, %13 : vector<2x8xi32>
    %cst_8 = arith.constant 0xFF800000 : f32
    %15 = vector.broadcast %cst_8 : f32 to vector<2x8xf32>
    %16 = arith.select %14, %15, %10 : vector<2x8xi1>, vector<2x8xf32>
    %cst_9 = arith.constant dense<0xFF800000> : vector<2xf32>
    %17 = vector.multi_reduction <maximumf>, %16, %cst_9 [1] : vector<2x8xf32> to vector<2xf32>
    %18 = vector.shape_cast %17 : vector<2xf32> to vector<2x1xf32>
    %19 = vector.broadcast %18 : vector<2x1xf32> to vector<2x8xf32>
    %20 = arith.subf %16, %19 : vector<2x8xf32>
    %21 = math.exp %20 : vector<2x8xf32>
    %cst_10 = arith.constant dense<0.000000e+00> : vector<2xf32>
    %22 = vector.multi_reduction <add>, %21, %cst_10 [1] : vector<2x8xf32> to vector<2xf32>
    %23 = vector.shape_cast %22 : vector<2xf32> to vector<2x1xf32>
    %24 = vector.broadcast %23 : vector<2x1xf32> to vector<2x8xf32>
    %25 = arith.divf %21, %24 : vector<2x8xf32>
    %c0_11 = arith.constant 0 : index
    %c0_12 = arith.constant 0 : index
    %26 = vector.load %arg5[%c0_11, %c0_12] : memref<2x8xf32, #tpu.memory_space<vmem>>, vector<2x8xf32>
    tpu.vector_store %arg5[%c0_11, %c0_12], %25 {strides = array<i32>} : memref<2x8xf32, #tpu.memory_space<vmem>>, vector<2x8xf32>,
    return
  }
  func.func @transform_0(%arg0: i32) -> (i32, i32, i32) {
    %c0_i32 = arith.constant 0 : i32
    %c0_i32_0 = arith.constant 0 : i32
    %c0_i32_1 = arith.constant 0 : i32
    return %arg0, %c0_i32, %c0_i32_0 : i32, i32, i32
  }
  func.func @transform_1(%arg0: i32) -> (i32, i32) {
    %c0_i32 = arith.constant 0 : i32
    %c0_i32_0 = arith.constant 0 : i32
    return %arg0, %c0_i32 : i32, i32
  }
  func.func @transform_2(%arg0: i32) -> (i32, i32) {
    %c0_i32 = arith.constant 0 : i32
    %c0_i32_0 = arith.constant 0 : i32
    %c0_i32_1 = arith.constant 0 : i32
    return %c0_i32, %c0_i32_0 : i32, i32
  }
  func.func @transform_3(%arg0: i32) -> (i32, i32) {
    %c0_i32 = arith.constant 0 : i32
    %c0_i32_0 = arith.constant 0 : i32
    %c0_i32_1 = arith.constant 0 : i32
    return %c0_i32, %c0_i32_0 : i32, i32
  }
  func.func @transform_4(%arg0: i32) -> (i32, i32) {
    %c0_i32 = arith.constant 0 : i32
    %c0_i32_0 = arith.constant 0 : i32
    return %arg0, %c0_i32 : i32, i32
  }
}

</mosaic_0001>

<bundles_post_ra>
// kernel: tpu_custom_call.1
= control target key start
LH: loop header
LB: loop body
LE: loop exit
PB: predicated region body
PF: predicated region fallthrough
CT: control target
= control target key end

     0   :  { %10 = vsyncpa [#allocation4], 0  ;;  %s274_s0 = inlined_call_operand.hbm [shape: bf16[2,8,32], index: 0, kind: input, shape index: {}]   ;;  %s275_s1 = inlined_call_operand.vmem [shape: s8[2,8], index: 1, kind: input, shape index: {}]   ;;  %s276_s2 = inlined_call_operand.vmem [shape: f32[1,32], index: 2, kind: input, shape index: {}]   ;;  %s277_s3 = inlined_call_operand.<no memory space> [shape: f32[1,1], index: 3, kind: input, shape index: {}]   ;;  %s278_s4 = inlined_call_operand.hbm [shape: f32[2,8], index: 4, kind: output, shape index: {}]  }
   0x1   :  { %11 = vsyncpa [#allocation5], 0  ;;  %s206_s15 = smov [#allocation3]   ;;  %s158_s19 = scalar_lea.hbm %s274_s0, 128 }
   0x2   :  { %s17_s16 = sshll.u32 %s206_s15, 4  ;;  %p159_p0 = scmp.ne.s32.totalorder %s274_s0, %s158_s19  ;;  %s18_s16 = int_to_ptr.vmem [resolvable:$true] %s17_s16 }
   0x3   :  { %p162_p1 = scmp.lt.u32.totalorder %s158_s19, %s274_s0 }
   0x5   :  { %p164_p2 = pnand %p162_p1, %p159_p0 }
   0x7   :  { %167 = shalt.err (!%p164_p2)
}
   0x8   :  { %s168_s24 = scalar_lea.vmem %s18_s16, 128  ;;  %p173_p4 = scmp.lt.s32.totalorder %s18_s16, %s18_s16 }
   0x9   :  { %p169_p3 = scmp.ne.s32.totalorder %s18_s16, %s168_s24  ;;  %p174_p5 = scmp.lt.s32.totalorder %s168_s24, %s168_s24 }
   0xb   :  { %p175_p6 = por %p174_p5, %p173_p4 }
   0xd   :  { %p176_p7 = pnand %p175_p6, %p169_p3 }
   0xf   :  { %179 = shalt.err (!%p176_p7)
}
  0x10   :  { %s207_s25 = smov 64   ;;  %s208_s26 = smov 4  }
  0x11   :  { %23 = dma.hbm_to_vmem [thread:$0]  %s274_s0, 128, %s18_s16, [#allocation4], %s207_s25, %s207_s25, %s208_s26  }
  0x12   :  { %202 = dma.done.wait [#allocation4], 128  }
  0x13   :  { %203 = vsyncadd [#allocation4], 4294967168  ;;  %v142_v0 = vld [vmem:[#allocation3] sm:$0xff]   ;;  %vm47_vm0 = vcmask 261120   ;;  %v209_v8 = vmov 0   ;;  %v65_v9 = vlaneseq  ;;  %v54_v19 = vstv %s277_s3 }
  0x14   :  { %v140_v1 = vld [vmem:[%s276_s2] ss:$0 sm:$0xff]  ;;  %v143_v2 = vunpack.c.l.bf16 %v142_v0  ;;  %v144_v3 = vunpack.c.h.bf16 %v142_v0  ;;  %152 = vset.pattern.permute.xlu1 %v209_v8  ;;  %153 = vset.pattern.permute.xlu0 %v209_v8  ;;  %v210_v13 = vmov 839922192   ;;  %v211_v15 = vmov 1985246804  }
  0x15   :  { %v66_v10 = vshrl.u32 %v65_v9, 7  ;;  %v99_v11 = vand.u32 127, %v65_v9  ;;  %v63_v14 = vunpack.c.l.s4 %v210_v13  ;;  %v70_v16 = vunpack.c.l.s4 %v211_v15  ;;  %v57_v32 = vld [vmem:[%s275_s1] sm:$0x1]  ;;  %s212_s1 = smov [#allocation6]  }
  0x16   :  { %v45_v4 = vmul.f32 %v143_v2, %v140_v1  ;;  %v46_v5 = vmul.f32 %v144_v3, %v140_v1  ;;  %v58_v34 = vunpack.c.0.s8 %v57_v32  ;;  %vm108_vm1 = vcmask 1041409   ;;  %s131_s3 = sshll.u32 %s212_s1, 4  ;;  %s132_s3 = int_to_ptr.vmem [resolvable:$true] %s131_s3 }
  0x17   :  { %v102_v12 = vsub.s32 %v99_v11, %v66_v10  ;;  %v64_v17 = vunpack.c.0.s8 %v63_v14  ;;  %v71_v18 = vunpack.c.0.s8 %v70_v16  ;;  %vm112_vm3 = vcmask 58368   ;;  %s180_s7 = scalar_lea.vmem %s132_s3, 32  ;;  %p185_p9 = scmp.lt.s32.totalorder %s132_s3, %s132_s3 }
  0x18   :  { %v48_v6 = vsel %vm47_vm0, %v45_v4, 0.0  ;;  %v51_v7 = vsel %vm47_vm0, %v46_v5, 0.0  ;;  %vm59_vm2 = vcmp.eq.s32.totalorder %v58_v34, 1  ;;  %p181_p8 = scmp.ne.s32.totalorder %s132_s3, %s180_s7  ;;  %p186_p10 = scmp.lt.s32.totalorder %s180_s7, %s180_s7 }
  0x19   :  { %49 = vadd.xlane.f32.xlu0 %v48_v6  ;;  %v67_v20 = vsub.s32 %v64_v17, %v66_v10  ;;  %v74_v21 = vsub.s32 %v71_v18, %v66_v10 }
  0x1a   :  { %p187_p11 = por %p186_p10, %p185_p9 }
  0x1c   :  { %p188_p12 = pnand %p187_p11, %p181_p8 }
  0x1d   :  { %52 = vadd.xlane.f32.xlu0 %v51_v7 }
  0xa6   :  { %v50_v22 = vpop.xlane.xlu0 %49 }
  0xa7   :  { %v55_v23 = vadd.f32 %v54_v19, %v50_v22 }
  0xa9   :  { %v68_v24 = vrot.slane %v55_v23, %v67_v20  ;;  %v75_v25 = vrot.slane %v55_v23, %v74_v21 }
  0xaa   :  { %v53_v26 = vpop.xlane.xlu0 %52 }
  0xab   :  { %v56_v27 = vadd.f32 %v54_v19, %v53_v26  ;;  %v90_v28 = vcombine.low %v68_v24, %v75_v25 }
  0xad   :  { %v82_v29 = vrot.slane %v56_v27, %v67_v20  ;;  %v89_v30 = vrot.slane %v56_v27, %v74_v21  ;;  %93 = vperm.xlu1 %152, %v90_v28  }
  0xaf   :  { %v91_v31 = vcombine.low %v82_v29, %v89_v30 }
  0xb1   :  { %96 = vperm.xlu1 %152, %v91_v31  }
 0x12c   :  { %v94_v33 = vpop.permute.xlu1 %93 }
 0x12d   :  { %v103_v36 = vrot.slane %v94_v33, %v102_v12 }
 0x130   :  { %v97_v35 = vpop.permute.xlu1 %96 }
 0x131   :  { %v107_v37 = vrot.slane %v97_v35, %v102_v12 }
 0x133   :  { %v109_v38 = vsel %vm108_vm1, %v107_v37, %v103_v36 }
 0x134   :  { %v111_v39 = vsel %vm59_vm2, -inf, %v109_v38 }
 0x135   :  { %v113_v40 = vsel %vm112_vm3, %v111_v39, -inf }
 0x136   :  { %114 = vmax.xlane.f32.xlu0 %v113_v40 }
 0x1c3   :  { %v115_v41 = vpop.xlane.xlu0 %114 }
 0x1c4   :  { %v116_v42 = vsub.f32 %v111_v39, %v115_v41 }
 0x1c6   :  { %v117_v43 = vmul.f32 1.442695, %v116_v42 }
 0x1c8   :  { %154 = vpow2.f32 %v117_v43 }
 0x1d2   :  { %v155_v44 = vpop.eup %154 }
 0x1d3   :  { %v119_v45 = vsel %vm112_vm3, %v155_v44, 0.0 }
 0x1d4   :  { %120 = vadd.xlane.f32.xlu1 %v119_v45 }
 0x261   :  { %v121_v46 = vpop.xlane.xlu1 %120 }
 0x262   :  { %156 = vrcp.f32 %v121_v46 }
 0x26c   :  { %v157_v47 = vpop.eup %156 }
 0x26d   :  { %v123_v48 = vmul.f32 %v157_v47, %v155_v44 }
 0x26f   :  { %124 = vst.msk [vmem:[#allocation6] sm:$0x3] %vm112_vm3, %v123_v48 }
 0x270   :  { %191 = shalt.err (!%p188_p12)
}
 0x271   :  { %s192_s10 = scalar_lea.hbm %s278_s4, 32 }
 0x272   :  { %p193_p13 = scmp.ne.s32.totalorder %s278_s4, %s192_s10  ;;  %p196_p0 = scmp.lt.u32.totalorder %s192_s10, %s278_s4 }
 0x274   :  { %p198_p1 = pnand %p196_p0, %p193_p13 }
 0x276   :  { %201 = shalt.err (!%p198_p1)
}
 0x277   :  { %134 = dma.vmem_to_hbm [thread:$0]  %s132_s3, 32, %s278_s4, [#allocation5]  }
 0x278   :  { %204 = dma.done.wait [#allocation5], 32  }
 0x279   :  { %205 = vsyncadd [#allocation5], 4294967264 }
 0x27a   :  { %138 = vsyncpa [#allocation4], 1 }
 0x27b   :  { %139 = vsyncpa [#allocation5], 1 }

</bundles_post_ra>
